<compile_context>
chip_gen: v7x
topology: tpu7x:2x2x1
jax: 0.10.0
libtpu: 0.0.40
codegen_flags: <defaults>
</compile_context>

<pallas_src>
import jax
import jax.numpy as jnp
from jax.experimental import pallas as pl
from jax.experimental.pallas import tpu as pltpu


# ----------------------------------------------------------------------------
# Kernel body: one grid step processes a (tn4, Dp) lane-packed row tile.
#   yp  = Y_packed @ blockdiag(W_pre) + b_pre            (bf16 MXU, f32 acc)
#   out = (X - yp) @ blockdiag(W_post[:D])
#       + (X * yp) @ blockdiag(W_post[D:]) + b_post
# ----------------------------------------------------------------------------
def matching_kernel(x_ref, y_ref, wpre_ref, bpre_ref, wpost1_ref, wpost2_ref,
                    bpost_ref, o_ref):
    # Y arrives as f32 (single HBM read); cast to bf16 right at the MXU input.
    yp = jnp.dot(y_ref[...].astype(jnp.bfloat16), wpre_ref[...],
                 preferred_element_type=jnp.float32) + bpre_ref[...]
    x = x_ref[...]                      # f32 elementwise math (v5e: no bf16 VPU)
    diff = x - yp                       # X - Y
    prod = x * yp                       # X .* Y
    out = (jnp.dot(diff.astype(jnp.bfloat16), wpost1_ref[...],
                   preferred_element_type=jnp.float32)
           + jnp.dot(prod.astype(jnp.bfloat16), wpost2_ref[...],
                     preferred_element_type=jnp.float32)
           + bpost_ref[...])
    o_ref[...] = out.astype(o_ref.dtype)


def _lane_pack(d):
    # Fold `pack` consecutive rows into the 128-lane dim so stores are
    # unmasked.  Degrades gracefully to pack=1 (full-dim blocks) otherwise.
    return 128 // d if (d < 128 and 128 % d == 0) else 1


def pack_matching_weights(w_pre_t, b_pre, w_post_t, b_post, *, node_emb_dim):
    """One-time (init-time) packing of weights into lane-dense block-diagonal
    bf16 operands.  Hoisted out of the per-call hot path; cache the result."""
    D = node_emb_dim
    pack = _lane_pack(D)
    eye = jnp.eye(pack, dtype=jnp.float32)
    w_pre_bd = jnp.kron(eye, w_pre_t).astype(jnp.bfloat16)            # (pack*H, pack*D)
    w_post1_bd = jnp.kron(eye, w_post_t[:D, :]).astype(jnp.bfloat16)  # (pack*D, pack*D)
    w_post2_bd = jnp.kron(eye, w_post_t[D:, :]).astype(jnp.bfloat16)  # (pack*D, pack*D)
    b_pre_p = jnp.tile(b_pre, pack).reshape(1, pack * D).astype(jnp.float32)
    b_post_p = jnp.tile(b_post, pack).reshape(1, pack * D).astype(jnp.float32)
    return dict(pack=pack, w_pre_bd=w_pre_bd, b_pre_p=b_pre_p,
                w_post1_bd=w_post1_bd, w_post2_bd=w_post2_bd, b_post_p=b_post_p)


def matching_transform(x, y, packed, *, max_rows_per_tile=8192):
    """x: (N, D) f32, y: (N, H) f32 -> (N, D) f32.

    Same math as the torch module in eval mode:
        Yp  = Y @ w_pre_t + b_pre
        out = concat([X - Yp, X * Yp], 1) @ w_post_t + b_post
    """
    N, D = x.shape
    Ny, H = y.shape
    assert N == Ny
    pack = packed["pack"]
    Dp, Hp = pack * D, pack * H

    # Lane-packing reshape needs N % pack == 0.  Only pad by < pack rows in
    # that rare case; tile raggedness itself is handled by Pallas boundary
    # masking, so no padding to a tile multiple is ever done.
    Np = N
    if N % pack != 0:
        Np = (N // pack + 1) * pack
        x = jnp.pad(x, ((0, Np - N), (0, 0)))
        y = jnp.pad(y, ((0, Np - N), (0, 0)))

    rows = Np // pack
    xp = x.reshape(rows, Dp)            # row-major reshape: free under jit
    ypk = y.reshape(rows, Hp)           # stays f32 -> single HBM read of Y

    # Row tile (in packed rows): big enough to amortize per-step overhead,
    # small enough for every generation's scoped VMEM at the 32 MiB limit,
    # and capped so the grid has >= 2 steps (v7x: two TensorCores).
    if rows <= 8:
        tn4 = rows                      # single full block
    else:
        tn4 = min(max(8, max_rows_per_tile // pack), rows)
        if rows >= 16:
            tn4 = min(tn4, pl.cdiv(rows, 2))
        tn4 = ((tn4 + 7) // 8) * 8      # sublane alignment
    grid = (pl.cdiv(rows, tn4),)

    full = lambda i: (0, 0)             # weights/biases: resident full blocks
    cost = pl.CostEstimate(
        flops=2 * Np * pack * (H + 2 * D) * D,
        transcendentals=0,
        bytes_accessed=(xp.size + ypk.size + rows * Dp) * 4
        + (packed["w_pre_bd"].size + packed["w_post1_bd"].size
           + packed["w_post2_bd"].size) * 2 + 2 * Dp * 4,
    )

    out_packed = pl.pallas_call(
        matching_kernel,
        out_shape=jax.ShapeDtypeStruct((rows, Dp), x.dtype),
        grid_spec=pl.GridSpec(
            grid=grid,
            in_specs=[
                pl.BlockSpec((tn4, Dp), lambda i: (i, 0)),   # X packed tile (f32)
                pl.BlockSpec((tn4, Hp), lambda i: (i, 0)),   # Y packed tile (f32)
                pl.BlockSpec((Hp, Dp), full),                # blockdiag W_pre (bf16)
                pl.BlockSpec((1, Dp), full),                 # b_pre (packed, f32)
                pl.BlockSpec((Dp, Dp), full),                # blockdiag W_post[:D]
                pl.BlockSpec((Dp, Dp), full),                # blockdiag W_post[D:]
                pl.BlockSpec((1, Dp), full),                 # b_post (packed, f32)
            ],
            out_specs=pl.BlockSpec((tn4, Dp), lambda i: (i, 0)),
        ),
        compiler_params=pltpu.CompilerParams(
            dimension_semantics=("parallel",),
            vmem_limit_bytes=32 * 1024 * 1024,
        ),
        cost_estimate=cost,
    )(xp, ypk, packed["w_pre_bd"], packed["b_pre_p"],
      packed["w_post1_bd"], packed["w_post2_bd"], packed["b_post_p"])

    out = out_packed.reshape(Np, D)
    return out if Np == N else out[:N]


# ----------------------------------------------------------------------------
# References for validation.
# ----------------------------------------------------------------------------
def reference_f32(x, y, w_pre_t, b_pre, w_post_t, b_post):
    yp = y @ w_pre_t + b_pre
    feat = jnp.concatenate([x - yp, x * yp], axis=-1)
    return feat @ w_post_t + b_post


def reference_bf16(x, y, w_pre_t, b_pre, w_post_t, b_post):
    """Mirrors the kernel's bf16 operand rounding and two-dot structure."""
    D = x.shape[1]
    yp = jnp.dot(y.astype(jnp.bfloat16), w_pre_t.astype(jnp.bfloat16),
                 preferred_element_type=jnp.float32) + b_pre
    diff = (x - yp).astype(jnp.bfloat16)
    prod = (x * yp).astype(jnp.bfloat16)
    return (jnp.dot(diff, w_post_t[:D, :].astype(jnp.bfloat16),
                    preferred_element_type=jnp.float32)
            + jnp.dot(prod, w_post_t[D:, :].astype(jnp.bfloat16),
                      preferred_element_type=jnp.float32)
            + b_post)


if __name__ == "__main__":
    # Small shapes implied by the module: N rows, node_emb_dim, hidden_dim.
    N, node_emb_dim, hidden_dim = 128, 32, 64

    key = jax.random.PRNGKey(0)
    kx, ky, k1, k2, k3, k4 = jax.random.split(key, 6)

    X = jax.random.normal(kx, (N, node_emb_dim), dtype=jnp.float32)
    Y = jax.random.normal(ky, (N, hidden_dim), dtype=jnp.float32)

    # preW: Linear(hidden_dim -> node_emb_dim); weight stored transposed (in, out)
    bound_pre = 1.0 / (hidden_dim ** 0.5)
    W_pre_t = jax.random.uniform(k1, (hidden_dim, node_emb_dim),
                                 minval=-bound_pre, maxval=bound_pre,
                                 dtype=jnp.float32)
    b_pre = jax.random.uniform(k2, (node_emb_dim,),
                               minval=-bound_pre, maxval=bound_pre,
                               dtype=jnp.float32)

    # postW: Linear(2*node_emb_dim -> node_emb_dim); weight transposed (in, out)
    bound_post = 1.0 / ((2 * node_emb_dim) ** 0.5)
    W_post_t = jax.random.uniform(k3, (2 * node_emb_dim, node_emb_dim),
                                  minval=-bound_post, maxval=bound_post,
                                  dtype=jnp.float32)
    b_post = jax.random.uniform(k4, (node_emb_dim,),
                                minval=-bound_post, maxval=bound_post,
                                dtype=jnp.float32)

    # One-time weight packing (hoisted out of the hot path; cache in practice).
    packed = pack_matching_weights(W_pre_t, b_pre, W_post_t, b_post,
                                   node_emb_dim=node_emb_dim)
    packed = jax.tree_util.tree_map(jax.block_until_ready, packed)

    out = matching_transform(X, Y, packed)
    out = jax.block_until_ready(out)
    assert out.shape == (N, node_emb_dim)

    # Exact-path check (same bf16 operand rounding and dot split as the kernel).
    ref_b = reference_bf16(X, Y, W_pre_t, b_pre, W_post_t, b_post)
    assert jnp.allclose(out, ref_b, atol=1e-3, rtol=1e-3), "mismatch vs bf16 reference"

    # End-to-end check vs full-f32 math; slack accounts for bf16 matmul operands.
    ref_f = reference_f32(X, Y, W_pre_t, b_pre, W_post_t, b_post)
    assert jnp.allclose(out, ref_f, atol=3e-2, rtol=3e-2), "mismatch vs f32 reference"

    # TODO(synk): dropout is treated as identity (inference/eval semantics).
    print("KERNEL_OK")
</pallas_src>

<mosaic_0001>
module attributes {stable_mosaic.version = 11 : i64} {
  func.func @matching_kernel(%arg0: i32, %arg1: memref<16x128xf32, #tpu.memory_space<vmem>>, %arg2: memref<16x256xf32, #tpu.memory_space<vmem>>, %arg3: memref<256x128xbf16, #tpu.memory_space<vmem>>, %arg4: memref<1x128xf32, #tpu.memory_space<vmem>>, %arg5: memref<128x128xbf16, #tpu.memory_space<vmem>>, %arg6: memref<128x128xbf16, #tpu.memory_space<vmem>>, %arg7: memref<1x128xf32, #tpu.memory_space<vmem>>, %arg8: memref<16x128xf32, #tpu.memory_space<vmem>>) attributes {dimension_semantics = [#tpu.dimension_semantics<parallel>], iteration_bounds = array<i64: 2>, scalar_prefetch = 0 : i64, scratch_operands = 0 : i64, tpu.core_type = #tpu.core_type<tc>, window_params = [{transform_indices = @transform_0, window_bounds = array<i64: 16, 128>}, {transform_indices = @transform_1, window_bounds = array<i64: 16, 256>}, {pipeline_mode = #tpu.pipeline_mode<synchronous>, transform_indices = @transform_2, window_bounds = array<i64: 256, 128>}, {pipeline_mode = #tpu.pipeline_mode<synchronous>, transform_indices = @transform_3, window_bounds = array<i64: 1, 128>}, {pipeline_mode = #tpu.pipeline_mode<synchronous>, transform_indices = @transform_4, window_bounds = array<i64: 128, 128>}, {pipeline_mode = #tpu.pipeline_mode<synchronous>, transform_indices = @transform_5, window_bounds = array<i64: 128, 128>}, {pipeline_mode = #tpu.pipeline_mode<synchronous>, transform_indices = @transform_6, window_bounds = array<i64: 1, 128>}, {transform_indices = @transform_7, window_bounds = array<i64: 16, 128>}]} {
    %c0 = arith.constant 0 : index
    %c0_0 = arith.constant 0 : index
    %0 = vector.load %arg2[%c0, %c0_0] : memref<16x256xf32, #tpu.memory_space<vmem>>, vector<16x256xf32>
    %1 = arith.truncf %0 : vector<16x256xf32> to vector<16x256xbf16>
    %c0_1 = arith.constant 0 : index
    %c0_2 = arith.constant 0 : index
    %2 = vector.load %arg3[%c0_1, %c0_2] : memref<256x128xbf16, #tpu.memory_space<vmem>>, vector<256x128xbf16>
    %cst = arith.constant dense<0.000000e+00> : vector<16x128xf32>
    %3 = tpu.matmul %1, %2, %cst {dimension_numbers = #tpu.dot_dimension_numbers<[1], [0], [0], [1], [0, 0, 1, 1], [], []>} : vector<16x256xbf16>, vector<256x128xbf16>, vector<16x128xf32> -> vector<16x128xf32>
    %c0_3 = arith.constant 0 : index
    %c0_4 = arith.constant 0 : index
    %4 = vector.load %arg4[%c0_3, %c0_4] : memref<1x128xf32, #tpu.memory_space<vmem>>, vector<1x128xf32>
    %5 = vector.broadcast %4 : vector<1x128xf32> to vector<16x128xf32>
    %6 = arith.addf %3, %5 : vector<16x128xf32>
    %c0_5 = arith.constant 0 : index
    %c0_6 = arith.constant 0 : index
    %7 = vector.load %arg1[%c0_5, %c0_6] : memref<16x128xf32, #tpu.memory_space<vmem>>, vector<16x128xf32>
    %8 = arith.subf %7, %6 : vector<16x128xf32>
    %9 = arith.mulf %7, %6 : vector<16x128xf32>
    %10 = arith.truncf %8 : vector<16x128xf32> to vector<16x128xbf16>
    %c0_7 = arith.constant 0 : index
    %c0_8 = arith.constant 0 : index
    %11 = vector.load %arg5[%c0_7, %c0_8] : memref<128x128xbf16, #tpu.memory_space<vmem>>, vector<128x128xbf16>
    %cst_9 = arith.constant dense<0.000000e+00> : vector<16x128xf32>
    %12 = tpu.matmul %10, %11, %cst_9 {dimension_numbers = #tpu.dot_dimension_numbers<[1], [0], [0], [1], [0, 0, 1, 1], [], []>} : vector<16x128xbf16>, vector<128x128xbf16>, vector<16x128xf32> -> vector<16x128xf32>
    %13 = arith.truncf %9 : vector<16x128xf32> to vector<16x128xbf16>
    %c0_10 = arith.constant 0 : index
    %c0_11 = arith.constant 0 : index
    %14 = vector.load %arg6[%c0_10, %c0_11] : memref<128x128xbf16, #tpu.memory_space<vmem>>, vector<128x128xbf16>
    %cst_12 = arith.constant dense<0.000000e+00> : vector<16x128xf32>
    %15 = tpu.matmul %13, %14, %cst_12 {dimension_numbers = #tpu.dot_dimension_numbers<[1], [0], [0], [1], [0, 0, 1, 1], [], []>} : vector<16x128xbf16>, vector<128x128xbf16>, vector<16x128xf32> -> vector<16x128xf32>
    %16 = arith.addf %12, %15 : vector<16x128xf32>
    %c0_13 = arith.constant 0 : index
    %c0_14 = arith.constant 0 : index
    %17 = vector.load %arg7[%c0_13, %c0_14] : memref<1x128xf32, #tpu.memory_space<vmem>>, vector<1x128xf32>
    %18 = vector.broadcast %17 : vector<1x128xf32> to vector<16x128xf32>
    %19 = arith.addf %16, %18 : vector<16x128xf32>
    %c0_15 = arith.constant 0 : index
    %c0_16 = arith.constant 0 : index
    %20 = vector.load %arg8[%c0_15, %c0_16] : memref<16x128xf32, #tpu.memory_space<vmem>>, vector<16x128xf32>
    tpu.vector_store %arg8[%c0_15, %c0_16], %19 {strides = array<i32>} : memref<16x128xf32, #tpu.memory_space<vmem>>, vector<16x128xf32>,
    return
  }
  func.func @transform_0(%arg0: i32) -> (i32, i32) {
    %c0_i32 = arith.constant 0 : i32
    %c0_i32_0 = arith.constant 0 : i32
    return %arg0, %c0_i32 : i32, i32
  }
  func.func @transform_1(%arg0: i32) -> (i32, i32) {
    %c0_i32 = arith.constant 0 : i32
    %c0_i32_0 = arith.constant 0 : i32
    return %arg0, %c0_i32 : i32, i32
  }
  func.func @transform_2(%arg0: i32) -> (i32, i32) {
    %c0_i32 = arith.constant 0 : i32
    %c0_i32_0 = arith.constant 0 : i32
    %c0_i32_1 = arith.constant 0 : i32
    return %c0_i32, %c0_i32_0 : i32, i32
  }
  func.func @transform_3(%arg0: i32) -> (i32, i32) {
    %c0_i32 = arith.constant 0 : i32
    %c0_i32_0 = arith.constant 0 : i32
    %c0_i32_1 = arith.constant 0 : i32
    return %c0_i32, %c0_i32_0 : i32, i32
  }
  func.func @transform_4(%arg0: i32) -> (i32, i32) {
    %c0_i32 = arith.constant 0 : i32
    %c0_i32_0 = arith.constant 0 : i32
    %c0_i32_1 = arith.constant 0 : i32
    return %c0_i32, %c0_i32_0 : i32, i32
  }
  func.func @transform_5(%arg0: i32) -> (i32, i32) {
    %c0_i32 = arith.constant 0 : i32
    %c0_i32_0 = arith.constant 0 : i32
    %c0_i32_1 = arith.constant 0 : i32
    return %c0_i32, %c0_i32_0 : i32, i32
  }
  func.func @transform_6(%arg0: i32) -> (i32, i32) {
    %c0_i32 = arith.constant 0 : i32
    %c0_i32_0 = arith.constant 0 : i32
    %c0_i32_1 = arith.constant 0 : i32
    return %c0_i32, %c0_i32_0 : i32, i32
  }
  func.func @transform_7(%arg0: i32) -> (i32, i32) {
    %c0_i32 = arith.constant 0 : i32
    %c0_i32_0 = arith.constant 0 : i32
    return %arg0, %c0_i32 : i32, i32
  }
}

</mosaic_0001>

<bundles_post_ra>
// kernel: tpu_custom_call.1
= control target key start
LH: loop header
LB: loop body
LE: loop exit
PB: predicated region body
PF: predicated region fallthrough
CT: control target
= control target key end

     0   :  { %s1832_s0 = inlined_call_operand.hbm [shape: f32[32,128], index: 0, kind: input, shape index: {}]   ;;  %s1833_s1 = inlined_call_operand.hbm [shape: f32[32,256], index: 1, kind: input, shape index: {}]   ;;  %s1834_s2 = inlined_call_operand.hbm [shape: bf16[256,128], index: 2, kind: input, shape index: {}]   ;;  %s1835_s3 = inlined_call_operand.vmem [shape: f32[1,128], index: 3, kind: input, shape index: {}]   ;;  %s1836_s4 = inlined_call_operand.hbm [shape: bf16[128,128], index: 4, kind: input, shape index: {}]   ;;  %s1837_s5 = inlined_call_operand.hbm [shape: bf16[128,128], index: 5, kind: input, shape index: {}]   ;;  %s1838_s6 = inlined_call_operand.vmem [shape: f32[1,128], index: 6, kind: input, shape index: {}]   ;;  %s1839_s7 = inlined_call_operand.hbm [shape: f32[32,128], index: 7, kind: output, shape index: {}]  }
   0x1   :  { %1844 = sst [smem:[#allocation18_spill]] %s1832_s0 }
   0x2   :  { %1845 = sst [smem:[#allocation19_spill]] %s1834_s2 }
   0x3   :  { %1846 = sst [smem:[#allocation20_spill]] %s1836_s4 }
   0x4   :  { %1847 = sst [smem:[#allocation21_spill]] %s1837_s5 }
   0x5   :  { %12 = vsyncpa [#allocation3], 0 }
   0x6   :  { %14 = vsyncpa [#allocation3 + $0x1], 0 }
   0x7   :  { %15 = vsyncpa [#allocation6], 0 }
   0x8   :  { %17 = vsyncpa [#allocation6 + $0x1], 0 }
   0x9   :  { %18 = vsyncpa [#allocation9], 0 }
   0xa   :  { %19 = vsyncpa [#allocation4], 0 }
   0xb   :  { %21 = vsyncpa [#allocation4 + $0x1], 0  ;;  %s1481_s24 = smov 0   ;;  %s1483_s25 = smov 0  }
   0xc   :  { %s1485_s26 = smov 0   ;;  %s1487_s27 = smov 0  }
   0xd LB: > { %s1502_s28 = sadd.s32 4294967295, %s1423_s27   ;;  %s934_s29 = sadd.s32 4294967294, %s1423_s27   ;;  %s1423_s27 = sphi %s1487_s27, %s1873_s27   ;;  %s1419_s26 = sphi %s1485_s26, %s1872_s26   ;;  %s1415_s25 = sphi %s1483_s25, %s1871_s25   ;;  %s1411_s24 = sphi %s1481_s24, %s1870_s24  }
   0xe   : > { %p47_p0 = scmp.ne.s32.totalorder %s1415_s25, %s1411_s24  ;;  %p1840_p1 = scmp.eq.s32.totalorder %s1502_s28, 0 }
   0xf   : > { %p208_p3 = scmp.eq.s32.totalorder %s934_s29, 1  ;;  %p935_p5 = scmp.ge.s32.totalorder %s1423_s27, 1 }
  0x10   : > { %p1511_p4 = por %p1840_p1, %p47_p0  ;;  %p215_p7 = scmp.lt.s32.totalorder %s1423_s27, 3 }
  0x11   : > { %p1516_p6 = por %p208_p3, %p47_p0  ;;  %s1425_s10 = smov [#allocation7]  }
  0x12   : > { %s1848_s30 = scalar_select %p1511_p4, 1, 0 }
  0x13   : > { %s1849_s8 = scalar_select %p1516_p6, 1, 0 }
  0x14   : > { %p1521_p8 = pnand %p935_p5, %p215_p7  ;;  %s227_s11 = sshll.u32 %s1425_s10, 4  ;;  %s1525_s11 = int_to_ptr.vmem [resolvable:$true] %s227_s11 }
  0x15   : > { %1850 = sst [smem:[#allocation17_spill]] %s1849_s8  ;;  %s1426_s13 = smov [#allocation8]  }
  0x16   : > { %s1851_s9 = scalar_select %p1521_p8, 1, 0 }
  0x17   : > { %p1095_p9 = pneg %p1521_p8  ;;  %s243_s14 = sshll.u32 %s1426_s13, 4  ;;  %s1536_s14 = int_to_ptr.vmem [resolvable:$true] %s243_s14 }
  0x18   : > { %s1427_s15 = smov [#allocation10]   ;;  %s1853_s2 = sld [smem:[#allocation19_spill]] }
  0x19   : > { %p1532_p11 = pnand %p1095_p9, %p1840_p1  ;;  %s1538_s16 = sshll.u32 %s1427_s15, 4  ;;  %s257_s16 = int_to_ptr.vmem [resolvable:$true] %s1538_s16 }
  0x1b   : > { %p1548_p13 = pneg %p1532_p11 }
  0x1e   : > { %s1201_s19 = scalar_lea.hbm %s1853_s2, 2048 }
  0x1f   : > { %p1202_p12 = scmp.ne.s32.totalorder %s1853_s2, %s1201_s19  ;;  %p1208_p5 = scmp.lt.u32.totalorder %s1201_s19, %s1853_s2 }
  0x21   : > { %p1204_p0 = pnand %p1548_p13, %p1202_p12 }
  0x23   : > { %p1205_p3 = pneg %p1204_p0 }
  0x25   : > { %p1210_p7 = pnand %p1208_p5, %p1205_p3 }
  0x27   : > { %1213 = shalt.err (!%p1210_p7)
}
  0x28   : > { %s1214_s10 = scalar_lea.vmem %s1525_s11, 2048  ;;  %p1222_p2 = scmp.lt.s32.totalorder %s1525_s11, %s1525_s11 }
  0x29   : > { %p1215_p9 = scmp.ne.s32.totalorder %s1525_s11, %s1214_s10  ;;  %p1223_p6 = scmp.lt.s32.totalorder %s1214_s10, %s1214_s10 }
  0x2b   : > { %p1217_p10 = pnand %p1215_p9, %p1548_p13  ;;  %p1224_p12 = por %p1223_p6, %p1222_p2 }
  0x2d   : > { %p1218_p1 = pneg %p1217_p10 }
  0x2f   : > { %p1225_p0 = pnand %p1224_p12, %p1218_p1 }
  0x31   : > { %1228 = shalt.err (!%p1225_p0)
}
  0x32   : > { %s1428_s13 = smov 64   ;;  %s1429_s15 = smov 4  }
  0x33   : > { %1098 = dma.hbm_to_vmem [thread:$0]  (!%p1532_p11), %s1853_s2, 2048, %s1525_s11, [#allocation6], %s1428_s13, %s1428_s13, %s1429_s15  }
  0x34   : > { %s1855_s4 = sld [smem:[#allocation20_spill]] }
  0x3a   : > { %s1229_s21 = scalar_lea.hbm %s1855_s4, 1024 }
  0x3b   : > { %p1230_p1 = scmp.ne.s32.totalorder %s1855_s4, %s1229_s21  ;;  %p1236_p10 = scmp.lt.u32.totalorder %s1229_s21, %s1855_s4 }
  0x3d   : > { %p1232_p2 = pnand %p1230_p1, %p1548_p13 }
  0x3f   : > { %p1233_p6 = pneg %p1232_p2 }
  0x41   : > { %p1238_p3 = pnand %p1236_p10, %p1233_p6 }
  0x43   : > { %1241 = shalt.err (!%p1238_p3)
}
  0x44   : > { %s1242_s11 = scalar_lea.vmem %s1536_s14, 1024  ;;  %p1250_p12 = scmp.lt.s32.totalorder %s1536_s14, %s1536_s14 }
  0x45   : > { %p1243_p5 = scmp.ne.s32.totalorder %s1536_s14, %s1242_s11  ;;  %p1251_p0 = scmp.lt.s32.totalorder %s1242_s11, %s1242_s11 }
  0x47   : > { %p1245_p7 = pnand %p1243_p5, %p1548_p13  ;;  %p1252_p1 = por %p1251_p0, %p1250_p12 }
  0x49   : > { %p1246_p9 = pneg %p1245_p7 }
  0x4b   : > { %p1253_p2 = pnand %p1252_p1, %p1246_p9 }
  0x4d   : > { %1256 = shalt.err (!%p1253_p2)
}
  0x4e   : > { %1101 = dma.hbm_to_vmem [thread:$0]  (!%p1532_p11), %s1855_s4, 1024, %s1536_s14, [#allocation9], %s1428_s13, %s1428_s13, %s1429_s15  }
  0x4f   : > { %s1856_s5 = sld [smem:[#allocation21_spill]] }
  0x55   : > { %s1257_s20 = scalar_lea.hbm %s1856_s5, 1024 }
  0x56   : > { %p1258_p6 = scmp.ne.s32.totalorder %s1856_s5, %s1257_s20  ;;  %p1264_p5 = scmp.lt.u32.totalorder %s1257_s20, %s1856_s5 }
  0x58   : > { %p1260_p10 = pnand %p1258_p6, %p1548_p13 }
  0x5a   : > { %p1261_p3 = pneg %p1260_p10 }
  0x5c   : > { %p1266_p7 = pnand %p1264_p5, %p1261_p3 }
  0x5e   : > { %1269 = shalt.err (!%p1266_p7)
}
  0x5f   : > { %s1270_s11 = scalar_lea.vmem %s257_s16, 1024  ;;  %p1278_p1 = scmp.lt.s32.totalorder %s257_s16, %s257_s16 }
  0x60   : > { %p1271_p9 = scmp.ne.s32.totalorder %s257_s16, %s1270_s11  ;;  %p1279_p2 = scmp.lt.s32.totalorder %s1270_s11, %s1270_s11 }
  0x62   : > { %p1273_p12 = pnand %p1271_p9, %p1548_p13  ;;  %p1280_p4 = por %p1279_p2, %p1278_p1 }
  0x64   : > { %p1274_p0 = pneg %p1273_p12 }
  0x66   : > { %p1281_p8 = pnand %p1280_p4, %p1274_p0 }
  0x68   : > { %1284 = shalt.err (!%p1281_p8)
}
  0x69   : > { %1104 = dma.hbm_to_vmem [thread:$0]  (!%p1532_p11), %s1856_s5, 1024, %s257_s16, [#allocation9], %s1428_s13, %s1428_s13, %s1429_s15  }
  0x6a   : > { %s1621_s22 = sadd.s32 1, %s1423_s27   ;;  %s34_s17 = sadd.s32 1, %s1419_s26 }
  0x6b   : > { %s31_s12 = ssub.s32 %s1423_s27, %s1621_s22  ;;  %p41_p8 = scmp.ne.s32.totalorder %s1419_s26, %s1415_s25 }
  0x6c   : > { %p32_p4 = scmp.eq.s32.totalorder %s31_s12, 0  ;;  %p42_p13 = scmp.eq.s32.totalorder %s1423_s27, 0 }
  0x6d   : > { %p1119_p6 = scmp.lt.s32.totalorder %s1423_s27, 2  ;;  %p1857_p3 = scmp.eq.s32.totalorder %s1502_s28, 1 }
  0x6e   : > { %s1631_s18 = scalar_select %p32_p4, %s1419_s26, %s34_s17  }
  0x6f   : > { %p43_p10 = por %p42_p13, %p41_p8  ;;  %p1635_p5 = por %p1857_p3, %p41_p8 }
  0x70   : > { %s1640_s20 = sand.u32 1, %s1419_s26   ;;  %s993_s16 = sshll.u32 %s1423_s27, 8 }
  0x71   : > { %s940_s13 = sshll.u32 %s1640_s20, 4  ;;  %s1859_s0 = sld [smem:[#allocation18_spill]] }
  0x72   : > { %s277_s29 = scalar_lea.vmem [#allocation2], %s940_s13  ;;  %p1649_p11 = pnand %p1119_p6, %p43_p10 }
  0x73   : > { %s284_s10 = sshll.u32 %s277_s29, 4  ;;  %s274_s14 = scalar_lea.sflag [#allocation3], %s1640_s20  ;;  %s1653_s10 = int_to_ptr.vmem [resolvable:$true] %s284_s10 }
  0x74   : > { %p1287_p9 = pneg %p1649_p11 }
  0x77   : > { %s1647_s23 = scalar_lea.hbm %s1859_s0, %s993_s16  ;;  %s1290_s16 = scalar_lea.hbm %s1859_s0, 512 }
  0x78   : > { %s1285_s8 = scalar_lea.hbm %s1647_s23, 256  ;;  %p1291_p1 = scmp.lt.u32.totalorder %s1647_s23, %s1859_s0 }
  0x79   : > { %p1286_p7 = scmp.ne.s32.totalorder %s1647_s23, %s1285_s8  ;;  %p1292_p2 = scmp.lt.u32.totalorder %s1290_s16, %s1285_s8 }
  0x7a   : > { %p1294_p8 = scmp.lt.u32.totalorder %s1285_s8, %s1647_s23 }
  0x7b   : > { %p1288_p12 = pnand %p1287_p9, %p1286_p7  ;;  %p1293_p4 = por %p1292_p2, %p1291_p1 }
  0x7d   : > { %p1289_p0 = pneg %p1288_p12  ;;  %p1295_p13 = por %p1294_p8, %p1293_p4 }
  0x7f   : > { %p1296_p6 = pnand %p1295_p13, %p1289_p0 }
  0x81   : > { %1299 = shalt.err (!%p1296_p6)
}
  0x82   : > { %s1300_s21 = scalar_lea.vmem %s1653_s10, 256  ;;  %s1430_s29 = smov [#allocation2]  }
  0x83   : > { %p1301_p10 = scmp.ne.s32.totalorder %s1653_s10, %s1300_s21  ;;  %s1305_s12 = sshll.u32 %s1430_s29, 4  ;;  %s1306_s12 = int_to_ptr.vmem [resolvable:$false] %s1305_s12 }
  0x84   : > { %s1307_s17 = scalar_lea.vmem %s1306_s12, 512  ;;  %p1308_p12 = scmp.lt.s32.totalorder %s1653_s10, %s1306_s12 }
  0x85   : > { %p1303_p3 = pnand %p1301_p10, %p1287_p9  ;;  %p1309_p1 = scmp.lt.s32.totalorder %s1307_s17, %s1300_s21 }
  0x87   : > { %p1304_p7 = pneg %p1303_p3  ;;  %p1310_p2 = por %p1309_p1, %p1308_p12 }
  0x89   : > { %p1311_p4 = pnand %p1310_p2, %p1304_p7 }
  0x8b   : > { %1314 = shalt.err (!%p1311_p4)
}
  0x8c   : > { %s1431_s8 = smov 128   ;;  %s1432_s16 = smov 8  }
  0x8d   : > { %1108 = dma.hbm_to_vmem [thread:$0]  (!%p1649_p11), %s1647_s23, 256, %s1653_s10, %s274_s14, %s1431_s8, %s1431_s8, %s1432_s16  }
  0x8e   : > { %s294_s13 = sand.u32 1, %s1423_s27   ;;  %s943_s15 = sshll.u32 %s1640_s20, 5 }
  0x8f   : > { %s995_s29 = sshll.u32 %s1423_s27, 9  ;;  %s298_s21 = scalar_lea.vmem [#allocation5], %s943_s15 }
  0x90   : > { %s306_s12 = sshll.u32 %s298_s21, 4  ;;  %s1689_s2 = scalar_lea.hbm %s1833_s1, %s995_s29  ;;  %s1691_s12 = int_to_ptr.vmem [resolvable:$true] %s306_s12 }
  0x91   : > { %s1693_s4 = scalar_lea.sflag [#allocation6], %s294_s13  ;;  %s1315_s5 = scalar_lea.hbm %s1689_s2, 512 }
  0x92   : > { %p1316_p0 = scmp.ne.s32.totalorder %s1689_s2, %s1315_s5  ;;  %s1320_s0 = scalar_lea.hbm %s1833_s1, 1024 }
  0x93   : > { %p1321_p6 = scmp.lt.u32.totalorder %s1689_s2, %s1833_s1  ;;  %p1322_p10 = scmp.lt.u32.totalorder %s1320_s0, %s1315_s5 }
  0x94   : > { %p1318_p8 = pnand %p1316_p0, %p1287_p9  ;;  %p1324_p7 = scmp.lt.u32.totalorder %s1315_s5, %s1689_s2 }
  0x95   : > { %p1323_p3 = por %p1322_p10, %p1321_p6 }
  0x96   : > { %p1319_p13 = pneg %p1318_p8 }
  0x97   : > { %p1325_p12 = por %p1324_p7, %p1323_p3 }
  0x99   : > { %p1326_p1 = pnand %p1325_p12, %p1319_p13 }
  0x9b   : > { %1329 = shalt.err (!%p1326_p1)
}
  0x9c   : > { %s1330_s8 = scalar_lea.vmem %s1691_s12, 512  ;;  %s1433_s16 = smov [#allocation5]  }
  0x9d   : > { %p1331_p2 = scmp.ne.s32.totalorder %s1691_s12, %s1330_s8  ;;  %s1335_s13 = sshll.u32 %s1433_s16, 4  ;;  %s1336_s13 = int_to_ptr.vmem [resolvable:$false] %s1335_s13 }
  0x9e   : > { %s1337_s15 = scalar_lea.vmem %s1336_s13, 1024  ;;  %p1338_p8 = scmp.lt.s32.totalorder %s1691_s12, %s1336_s13 }
  0x9f   : > { %p1333_p4 = pnand %p1331_p2, %p1287_p9  ;;  %p1339_p6 = scmp.lt.s32.totalorder %s1337_s15, %s1330_s8 }
  0xa1   : > { %p1334_p0 = pneg %p1333_p4  ;;  %p1340_p10 = por %p1339_p6, %p1338_p8 }
  0xa3   : > { %p1341_p3 = pnand %p1340_p10, %p1334_p0 }
  0xa5   : > { %1344 = shalt.err (!%p1341_p3)
}
  0xa6   : > { %s1434_s5 = smov 256   ;;  %s1435_s29 = smov 16  }
  0xa7   : > { %1111 = dma.hbm_to_vmem [thread:$0]  (!%p1649_p11), %s1689_s2, 512, %s1691_s12, %s1693_s4, %s1434_s5, %s1434_s5, %s1435_s29  }
  0xa8   : > { %p1861_p9 = scmp.ne.s32.totalorder %s1851_s9, 0 }
  0xa9   : > { %s1722_s21 = sand.u32 (!%p1861_p9), 1, %s1415_s25   ;;  %p1862_p13 = scmp.ne.s32.totalorder (!%p1861_p9), %s1848_s30, 0 }
  0xaa   : > { %318 = sbr.rel (%p1861_p9) target bundleno = 677 (0x2a5), region = 48  ;;  %s948_s17 = sshll.u32 (!%p1861_p9), %s1722_s21, 4 }
  0xab   : > { %s321_s20 = scalar_lea.sflag (!%p1861_p9), [#allocation3], %s1722_s21  ;;  %s1728_s23 = scalar_lea.vmem (!%p1861_p9), [#allocation2], %s948_s17 }
  0xb1   : > { %1390 = dma.done.wait (%p1862_p13), %s321_s20, 256  }
  0xb2   : > { %1392 = vsyncadd (%p1862_p13), %s321_s20, 4294967040  ;;  %s329_s2 = sand.u32 1, %s1502_s28   ;;  %s949_s4 = sshll.u32 %s1722_s21, 5 }
  0xb3   : > { %s330_s9 = scalar_lea.sflag [#allocation6], %s329_s2  ;;  %s1736_s11 = scalar_lea.vmem [#allocation5], %s949_s4 }
  0xb4   : > { %1394 = dma.done.wait (%p1862_p13), %s330_s9, 512  }
  0xb5   : > { %1396 = vsyncadd (%p1862_p13), %s330_s9, 4294966784  ;;  %p1863_p11 = scmp.eq.s32.totalorder %s1502_s28, 0 }
  0xb7   : > { %1398 = dma.done.wait (%p1863_p11), [#allocation6], 2048   ;;  %p1864_p7 = pmov %p1863_p11 }
  0xb9   : > { %1400 = vsyncadd (%p1864_p7), [#allocation6], 4294965248  ;;  %p1865_p12 = pmov %p1864_p7 }
  0xba   : > { %p1866_p1 = pmov %p1864_p7 }
  0xbb   : > { %1402 = dma.done.wait (%p1865_p12), [#allocation9], 2048  }
  0xbc   : > { %1404 = vsyncadd (%p1866_p1), [#allocation9], 4294965248  ;;  %v1436_v0 = vmov 0.0   ;;  %v1169_v1 = vld [vmem:[#allocation7 + $0x40] sm:$0xff]   ;;  %v1171_v3 = vld [vmem:[#allocation7 + $0x48] sm:$0xff]   ;;  %vm1437_vm0 = vmmov 0  }
  0xbd   : > { %1037 = vmatprep.subr.bf16.mxu1 %v1436_v0  ;;  %v1170_v2 = vld [vmem:[#allocation7] sm:$0xff]   ;;  %997 = vmatprep.subr.bf16.mxu0 %v1169_v1  ;;  %v1172_v4 = vld [vmem:[#allocation7 + $0x8] sm:$0xff]   ;;  %v1173_v5 = vld [vmem:[#allocation7 + $0x50] sm:$0xff]   ;;  %s380_s14 = scalar_lea.vmem [#allocation11], %s948_s17  ;;  %s996_s16 = sshll.u32 %s1502_s28, 8 }
  0xbe   : > { %998 = vmatpush3.bf16.msra.mxu0 %v1170_v2  ;;  %v1174_v6 = vld [vmem:[#allocation7 + $0x10] sm:$0xff]   ;;  %v1175_v7 = vld [vmem:[#allocation7 + $0x58] sm:$0xff]   ;;  %v1177_v9 = vld [vmem:[#allocation7 + $0x60] sm:$0xff]   ;;  %1053 = vmatprep.mubr.msk.bf16.mxu1 %vm1437_vm0, %v1436_v0  ;;  %s810_s8 = sshll.u32 %s380_s14, 4  ;;  %s1788_s5 = scalar_lea.hbm %s1839_s7, %s996_s16  ;;  %s1783_s8 = int_to_ptr.vmem [resolvable:$true] %s810_s8 }
  0xbf   : > { %999 = vmatprep.subr.bf16.mxu0 %v1171_v3  ;;  %v1176_v8 = vld [vmem:[#allocation7 + $0x18] sm:$0xff]   ;;  %v1178_v10 = vld [vmem:[#allocation7 + $0x20] sm:$0xff]   ;;  %v1179_v11 = vld [vmem:[#allocation7 + $0x68] sm:$0xff]   ;;  %s797_s28 = scalar_lea.sflag [#allocation4], %s1722_s21  ;;  %s1345_s29 = scalar_lea.vmem %s1783_s8, 256 }
  0xc0   : > { %v386_v12 = vld [vmem:[%s1736_s11 + $0x8] sm:$0xff]  ;;  %v388_v13 = vld [vmem:[%s1736_s11 + $0x18] sm:$0xff]  ;;  %v1185_v16 = vld [vmem:[#allocation10] sm:$0xff]   ;;  %p1346_p2 = scmp.ne.s32.totalorder %s1783_s8, %s1345_s29  ;;  %s1438_s17 = smov [#allocation11]  }
  0xc1   : > { %v1180_v14 = vld [vmem:[#allocation7 + $0x28] sm:$0xff]   ;;  %v390_v15 = vpack.c.bf16 %v388_v13, %v386_v12  ;;  %v1181_v17 = vld [vmem:[#allocation7 + $0x70] sm:$0xff]   ;;  %1038 = vmatpush3.bf16.msra.mxu1 %v1185_v16  ;;  %v1183_v20 = vld [vmem:[#allocation7 + $0x78] sm:$0xff]   ;;  %s1349_s20 = sshll.u32 %s1438_s17, 4  ;;  %s1350_s20 = int_to_ptr.vmem [resolvable:$false] %s1349_s20 }
  0xc2   : > { %1000 = vmatpush3.bf16.msra.mxu0 %v1172_v4  ;;  %v1187_v18 = vld [vmem:[#allocation10 + $0x8] sm:$0xff]   ;;  %1039 = vmatprep.subr.bf16.mxu1 %v1436_v0  ;;  %v1182_v19 = vld [vmem:[#allocation7 + $0x30] sm:$0xff]   ;;  %v1184_v22 = vld [vmem:[#allocation7 + $0x38] sm:$0xff]   ;;  %p1347_p4 = pnand %p1346_p2, %p1635_p5  ;;  %p1352_p8 = scmp.lt.s32.totalorder %s1783_s8, %s1350_s20 }
  0xc3   : > { %1001 = vmatprep.subr.bf16.mxu0 %v1173_v5  ;;  %558 = vmatprep.mubr.bf16.mxu0 %v390_v15  ;;  %v1189_v21 = vld [vmem:[#allocation10 + $0x10] sm:$0xff]   ;;  %v385_v23 = vld [vmem:[%s1736_s11] sm:$0xff]  ;;  %v1191_v25 = vld [vmem:[#allocation10 + $0x18] sm:$0xff]  }
  0xc4   : > { %v387_v24 = vld [vmem:[%s1736_s11 + $0x10] sm:$0xff]  ;;  %v1186_v27 = vld [vmem:[#allocation8] sm:$0xff]   ;;  %v1188_v29 = vld [vmem:[#allocation8 + $0x8] sm:$0xff]   ;;  %p1348_p0 = pneg %p1347_p4 }
  0xc5   : > { %1040 = vmatpush3.bf16.msra.mxu1 %v1187_v18  ;;  %v389_v26 = vpack.c.bf16 %v387_v24, %v385_v23  ;;  %v1193_v28 = vld [vmem:[#allocation10 + $0x20] sm:$0xff]   ;;  %v1190_v30 = vld [vmem:[#allocation8 + $0x10] sm:$0xff]   ;;  %v1192_v31 = vld [vmem:[#allocation8 + $0x18] sm:$0xff]  }
  0xc6   : > { %1002 = vmatpush3.bf16.msra.mxu0 %v1174_v6  ;;  %1041 = vmatprep.subr.bf16.mxu1 %v1436_v0  ;;  %v1194_v32 = vld [vmem:[#allocation8 + $0x20] sm:$0xff]   ;;  %v1195_v33 = vld [vmem:[#allocation10 + $0x28] sm:$0xff]   ;;  %v1197_v35 = vld [vmem:[#allocation10 + $0x30] sm:$0xff]  }
  0xc7   : > { %1003 = vmatprep.subr.bf16.mxu0 %v1175_v7  ;;  %v1196_v34 = vld [vmem:[#allocation8 + $0x28] sm:$0xff]   ;;  %v1198_v36 = vld [vmem:[#allocation8 + $0x30] sm:$0xff]   ;;  %v1199_v37 = vld [vmem:[#allocation10 + $0x38] sm:$0xff]  }
  0xc8   : > { %v1200_v38 = vld [vmem:[#allocation8 + $0x38] sm:$0xff]   ;;  %v954_v40 = vld [vmem:[%s1835_s3] ss:$0 sm:$0xff] }
  0xc9   : > { %1042 = vmatpush3.bf16.msra.mxu1 %v1189_v21  ;;  %v567_v47 = vld [vmem:[%s1728_s23] sm:$0xff]  ;;  %v568_v48 = vld [vmem:[%s1728_s23 + $0x8] sm:$0xff]  ;;  %s1351_s23 = scalar_lea.vmem %s1350_s20, 512 }
  0xca   : > { %1004 = vmatpush3.bf16.msra.mxu0 %v1176_v8  ;;  %1043 = vmatprep.subr.bf16.mxu1 %v1436_v0  ;;  %v987_v58 = vld [vmem:[%s1838_s6] ss:$0 sm:$0xff]  ;;  %p1353_p6 = scmp.lt.s32.totalorder %s1351_s23, %s1345_s29 }
  0xcb   : > { %1005 = vmatprep.subr.bf16.mxu0 %v1177_v9 }
  0xcc   : > { %p1354_p10 = por %p1353_p6, %p1352_p8 }
  0xcd   : > { %1044 = vmatpush3.bf16.msra.mxu1 %v1191_v25 }
  0xce   : > { %1006 = vmatpush3.bf16.msra.mxu0 %v1178_v10  ;;  %1045 = vmatprep.subr.bf16.mxu1 %v1436_v0  ;;  %p1355_p3 = pnand %p1354_p10, %p1348_p0 }
  0xcf   : > { %1007 = vmatprep.subr.bf16.mxu0 %v1179_v11 }
  0xd1   : > { %1046 = vmatpush3.bf16.msra.mxu1 %v1193_v28 }
  0xd2   : > { %1008 = vmatpush3.bf16.msra.mxu0 %v1180_v14  ;;  %1047 = vmatprep.subr.bf16.mxu1 %v1436_v0 }
  0xd3   : > { %1009 = vmatprep.subr.bf16.mxu0 %v1181_v17 }
  0xd5   : > { %1048 = vmatpush3.bf16.msra.mxu1 %v1195_v33 }
  0xd6   : > { %1010 = vmatpush3.bf16.msra.mxu0 %v1182_v19  ;;  %1049 = vmatprep.subr.bf16.mxu1 %v1436_v0 }
  0xd7   : > { %1011 = vmatprep.subr.bf16.mxu0 %v1183_v20 }
  0xd9   : > { %1050 = vmatpush3.bf16.msra.mxu1 %v1197_v35 }
  0xda   : > { %1012 = vmatpush3.bf16.msra.mxu0 %v1184_v22  ;;  %1051 = vmatprep.subr.bf16.mxu1 %v1436_v0 }
  0xdb   : > { %1057 = vmatprep.subr.bf16.mxu0 %v1436_v0 }
  0xdd   : > { %559 = vmatmul.mubr.bf16.vlgmr.msra.gmra.mrb[0].mxu0 %v389_v26  ;;  %1052 = vmatpush3.bf16.msra.mxu1 %v1199_v37 }
  0xde   : > { %1058 = vmatpush3.bf16.msra.mxu0 %v1186_v27  ;;  %1073 = vmatprep.mubr.msk.bf16.mxu0 %vm1437_vm0, %v1436_v0 }
  0xdf   : > { %1059 = vmatprep.subr.bf16.mxu0 %v1436_v0 }
  0xe2   : > { %1060 = vmatpush3.bf16.msra.mxu0 %v1188_v29 }
  0xe3   : > { %1061 = vmatprep.subr.bf16.mxu0 %v1436_v0 }
  0xe6   : > { %1062 = vmatpush3.bf16.msra.mxu0 %v1190_v30 }
  0xe7   : > { %1063 = vmatprep.subr.bf16.mxu0 %v1436_v0 }
  0xea   : > { %1064 = vmatpush3.bf16.msra.mxu0 %v1192_v31 }
  0xeb   : > { %1065 = vmatprep.subr.bf16.mxu0 %v1436_v0 }
  0xee   : > { %1066 = vmatpush3.bf16.msra.mxu0 %v1194_v32 }
  0xef   : > { %1067 = vmatprep.subr.bf16.mxu0 %v1436_v0 }
  0xf2   : > { %1068 = vmatpush3.bf16.msra.mxu0 %v1196_v34 }
  0xf3   : > { %1069 = vmatprep.subr.bf16.mxu0 %v1436_v0 }
  0xf6   : > { %1070 = vmatpush3.bf16.msra.mxu0 %v1198_v36 }
  0xf7   : > { %1071 = vmatprep.subr.bf16.mxu0 %v1436_v0 }
  0xfa   : > { %1072 = vmatpush3.bf16.msra.mxu0 %v1200_v38 }
 0x1b0   : > { %v1013_v39 = vpop.f32.mrb[0].mxu0 }
 0x1b1   : > { %v1014_v41 = vpop.f32.mrb[1].mxu0 }
 0x1b2   : > { %v1015_v42 = vadd.f32 %v1014_v41, %v1013_v39  ;;  %v1016_v43 = vpop.f32.mrb[2].mxu0 }
 0x1b3   : > { %v1017_v44 = vpop.f32.mrb[3].mxu0 }
 0x1b4   : > { %v561_v45 = vadd.f32 %v1015_v42, %v954_v40  ;;  %v1018_v46 = vadd.f32 %v1017_v44, %v1016_v43 }
 0x1b6   : > { %v564_v49 = vadd.f32 %v1018_v46, %v954_v40  ;;  %v569_v50 = vsub.f32 %v567_v47, %v561_v45  ;;  %v571_v51 = vmul.f32 %v567_v47, %v561_v45 }
 0x1b8   : > { %v570_v52 = vsub.f32 %v568_v48, %v564_v49  ;;  %v572_v53 = vmul.f32 %v568_v48, %v564_v49 }
 0x1ba   : > { %v573_v54 = vpack.c.bf16 %v570_v52, %v569_v50  ;;  %v590_v55 = vpack.c.bf16 %v572_v53, %v571_v51 }
 0x1bc   : > { %1054 = vmatmul.mubr.bf16.vlgmr.msra.gmra.mrb[0].mxu1 %v590_v55  ;;  %1074 = vmatmul.mubr.bf16.vlgmr.msra.gmra.mrb[4].mxu0 %v573_v54 }
 0x28f   : > { %v689_v56 = vpop.f32.mrb[0].mxu1  ;;  %v778_v57 = vpop.f32.mrb[4].mxu0 }
 0x290   : > { %v779_v59 = vadd.f32 %v778_v57, %v689_v56  ;;  %v1055_v60 = vpop.f32.mrb[1].mxu1  ;;  %v1075_v61 = vpop.f32.mrb[5].mxu0 }
 0x291   : > { %v692_v62 = vpop.f32.mrb[2].mxu1  ;;  %v781_v63 = vpop.f32.mrb[6].mxu0 }
 0x292   : > { %v792_v0 = vadd.f32 %v987_v58, %v779_v59  ;;  %v782_v1 = vadd.f32 %v781_v63, %v692_v62  ;;  %v1056_v2 = vpop.f32.mrb[3].mxu1  ;;  %v1076_v3 = vpop.f32.mrb[7].mxu0 }
 0x294   : > { %794 = vst [vmem:[%s380_s14] sm:$0xff] %v792_v0  ;;  %v793_v4 = vadd.f32 %v987_v58, %v782_v1 }
 0x296   : > { %795 = vst [vmem:[%s380_s14 + $0x8] sm:$0xff] %v793_v4 }
 0x297   : > { %1358 = shalt.err (!%p1355_p3)
}
 0x298   : > { %s1359_s2 = scalar_lea.hbm %s1788_s5, 256  ;;  %s1363_s11 = scalar_lea.hbm %s1839_s7, 512 }
 0x299   : > { %p1360_p9 = scmp.ne.s32.totalorder %s1788_s5, %s1359_s2  ;;  %p1364_p7 = scmp.lt.u32.totalorder %s1788_s5, %s1839_s7 }
 0x29a   : > { %p1365_p12 = scmp.lt.u32.totalorder %s1363_s11, %s1359_s2  ;;  %p1367_p2 = scmp.lt.u32.totalorder %s1359_s2, %s1788_s5 }
 0x29b   : > { %p1361_p13 = pnand %p1360_p9, %p1635_p5 }
 0x29c   : > { %p1366_p1 = por %p1365_p12, %p1364_p7 }
 0x29d   : > { %p1362_p11 = pneg %p1361_p13 }
 0x29e   : > { %p1368_p4 = por %p1367_p2, %p1366_p1 }
 0x2a0   : > { %p1369_p0 = pnand %p1368_p4, %p1362_p11 }
 0x2a2   : > { %1372 = shalt.err (!%p1369_p0)
}
 0x2a3   : > { %s1439_s0 = smov 128   ;;  %s1440_s10 = smov 8  }
 0x2a4   : > { %1093 = dma.vmem_to_hbm [thread:$0]  (%p1635_p5), %s1783_s8, 256, %s1788_s5, %s797_s28, %s1439_s0, %s1439_s0, %s1440_s10  }
 0x2a5 PF: > { %s1867_s14 = sld [smem:[#allocation17_spill]]  ;;  %s825_s16 = sand.u32 1, %s1411_s24  }
 0x2a6   : > { %p1869_p6 = scmp.ge.s32.totalorder %s1423_s27, 2  ;;  %s826_s13 = scalar_lea.sflag [#allocation4], %s825_s16 }
 0x2ab   : > { %p1868_p8 = scmp.ne.s32.totalorder %s1867_s14, 0 }
 0x2ad   : > { %p1113_p10 = pnand %p1869_p6, %p1868_p8 }
 0x2af   : > { %1406 = dma.done.wait (!%p1113_p10), %s826_s13, 256  }
 0x2b0   : > { %1408 = vsyncadd (!%p1113_p10), %s826_s13, 4294967040  ;;  %p24_p3 = scmp.ge.s32.totalorder %s1621_s22, 4   ;;  %s1870_s24 = smov %s1415_s25 }
 0x2b1   : > { %s1871_s25 = smov %s1419_s26  ;;  %s1872_s26 = smov %s1631_s18 }
 0x2b2   : > { %s1873_s27 = smov %s1621_s22  ;;  %26 = sbr.rel (!%p24_p3) target bundleno = 13 (0xd), region = 118 }
 0x2b9   :  { %831 = vsyncpa [#allocation3], 1 }
 0x2ba   :  { %833 = vsyncpa [#allocation3 + $0x1], 1 }
 0x2bb   :  { %834 = vsyncpa [#allocation6], 1 }
 0x2bc   :  { %836 = vsyncpa [#allocation6 + $0x1], 1 }
 0x2bd   :  { %837 = vsyncpa [#allocation9], 1 }
 0x2be   :  { %838 = vsyncpa [#allocation4], 1 }
 0x2bf   :  { %840 = vsyncpa [#allocation4 + $0x1], 1 }

</bundles_post_ra>
